<compile_context>
chip_gen: v6e
topology: v6e:2x2x1
jax: 0.10.0
libtpu: 0.0.40
codegen_flags: <defaults>
</compile_context>

<pallas_src>
import jax
import jax.numpy as jnp
from jax.experimental import pallas as pl
from jax.experimental.pallas import tpu as pltpu

_LANE = 128                       # lane width of a vreg (last-dim granularity)
_TARGET_TILE_BYTES = 2 * 1024 * 1024   # ~2 MiB per tile -> ~8-10 MiB of live buffers


def _sublane_pack(dtype):
    """Sublane packing factor: 8 rows for 4-byte, 16 for 2-byte, 32 for 1-byte."""
    itemsize = jnp.dtype(dtype).itemsize
    return max(8, 32 // itemsize)


def _one_to_one_kernel(x_ref, w_ref, o_ref):
    # x_ref: (TB, TF) input tile; w_ref: (1, TF) weight row (broadcast along
    # sublanes); o_ref: (TB, TF) output tile.  Pure VPU elementwise multiply.
    o_ref[...] = x_ref[...] * w_ref[...]


def _scaled_rows(x, w_row, tile_b=None, tile_f=None):
    """x: (B, F) with F % 128 == 0, w_row: (1, F) same dtype.  Returns x * w_row."""
    B, F = x.shape
    itemsize = jnp.dtype(x.dtype).itemsize
    pack = _sublane_pack(x.dtype)

    # Feature (lane) tile: up to 1024 lanes, always a multiple of 128 (or == F).
    if tile_f is None:
        tile_f = min(F, 8 * _LANE)
    tile_f = min(tile_f, F)

    # Batch (sublane) tile: target ~2 MiB tiles; multiple of the dtype packing
    # when tiling, or exactly B (block == full dim, always legal) when B fits.
    if tile_b is None:
        tile_b = max(pack, _TARGET_TILE_BYTES // (tile_f * itemsize))
    if tile_b >= B:
        tile_b = B
    else:
        tile_b = max(pack, (tile_b // pack) * pack)

    grid = (pl.cdiv(B, tile_b), pl.cdiv(F, tile_f))

    # Double-buffered input + output tiles (+ tiny weight row) with headroom.
    # Capped at 48 MiB so the scoped limit stays safe on v7x (64 MiB physical)
    # while still raising the default where bigger tiles are requested.
    tile_bytes = tile_b * tile_f * itemsize
    vmem_limit = min(48 * 1024 * 1024, max(32 * 1024 * 1024, 6 * tile_bytes))

    return pl.pallas_call(
        _one_to_one_kernel,
        out_shape=jax.ShapeDtypeStruct((B, F), x.dtype),
        grid=grid,
        in_specs=[
            pl.BlockSpec((tile_b, tile_f), lambda i, j: (i, j)),
            pl.BlockSpec((1, tile_f), lambda i, j: (0, j)),
        ],
        out_specs=pl.BlockSpec((tile_b, tile_f), lambda i, j: (i, j)),
        compiler_params=pltpu.CompilerParams(
            dimension_semantics=("parallel", "parallel"),
            vmem_limit_bytes=vmem_limit,
        ),
    )(x, w_row)


def one_to_one_linear(x, weight, *, tile_b=None, tile_f=None):
    """Pallas implementation of OneToOneLinear.forward.

    Args:
      x:      (B, F) input.
      weight: (F,)   per-feature weight.
    Returns:
      (B, F) output = x * weight (broadcast over batch), dtype of x.
    """
    B, F = x.shape
    assert weight.shape == (F,), "weight must be 1-D with length nFeatures"
    w = weight.astype(x.dtype)  # avoid in-kernel dtype promotion + down-cast

    # Fast path: already lane-dense.
    if F % _LANE == 0:
        return _scaled_rows(x, w.reshape(1, F), tile_b, tile_f)

    # Small F: fold batch rows into lanes so the output last dim is exactly 128
    # (unmasked, full-lane stores).  (B, F) -> (B/k, k*F) with k*F == 128.
    if F < _LANE and _LANE % F == 0 and B % (_LANE // F) == 0:
        k = _LANE // F
        x_f = x.reshape(B // k, k * F)
        w_f = jnp.tile(w, (k,)).reshape(1, k * F)
        out = _scaled_rows(x_f, w_f, tile_b, tile_f)
        return out.reshape(B, F)

    # General fallback: pad F up to the next multiple of 128, then slice back.
    f_pad = ((F + _LANE - 1) // _LANE) * _LANE
    x_p = jnp.pad(x, ((0, 0), (0, f_pad - F)))
    w_p = jnp.pad(w, (0, f_pad - F)).reshape(1, f_pad)
    out = _scaled_rows(x_p, w_p, tile_b, tile_f)
    return out[:, :F]


if __name__ == "__main__":
    key = jax.random.PRNGKey(0)
    kx, kw, kx2, kx3 = jax.random.split(key, 4)

    # Shapes implied by the module: (batch, nFeatures).
    B, F = 8, 32
    x = jax.random.normal(kx, (B, F), dtype=jnp.float32)
    # Module __init__ sets weight = ones(nFeatures); perturb deterministically.
    weight = jnp.ones((F,), dtype=jnp.float32) + 0.1 * jax.random.normal(
        kw, (F,), dtype=jnp.float32
    )

    out = jax.block_until_ready(one_to_one_linear(x, weight))
    ref = x * weight[None, :]
    assert out.shape == (B, F)
    assert out.dtype == x.dtype
    assert jnp.allclose(out, ref, atol=1e-6, rtol=1e-6)

    # Pad path: F not a divisor of 128 (padded to 256 lanes, then sliced back).
    B2, F2 = 10, 200
    x2 = jax.random.normal(kx2, (B2, F2), dtype=jnp.float32)
    w2 = jax.random.normal(kw, (F2,), dtype=jnp.float32)
    out2 = jax.block_until_ready(one_to_one_linear(x2, w2))
    assert jnp.allclose(out2, x2 * w2[None, :], atol=1e-6, rtol=1e-6)

    # Lane-dense bf16 path with a multi-step ragged batch grid (cdiv last block)
    # and the weight cast to x.dtype inside the wrapper.
    B3, F3 = 20, 256
    x3 = jax.random.normal(kx3, (B3, F3), dtype=jnp.bfloat16)
    w3 = jnp.full((F3,), 0.5, dtype=jnp.float32)
    out3 = jax.block_until_ready(one_to_one_linear(x3, w3, tile_b=16))
    ref3 = (x3.astype(jnp.float32) * 0.5).astype(jnp.bfloat16)
    assert out3.dtype == jnp.bfloat16
    assert jnp.allclose(out3.astype(jnp.float32), ref3.astype(jnp.float32),
                        atol=1e-2, rtol=1e-2)

    # TODO(synk): backward pass (grad_input / grad_weight) not implemented; the
    # spec only requires the forward pass here.
    print("KERNEL_OK")
</pallas_src>

<mosaic_0001>
module attributes {stable_mosaic.version = 11 : i64} {
  func.func @_one_to_one_kernel(%arg0: i32, %arg1: i32, %arg2: memref<2x128xf32, #tpu.memory_space<vmem>>, %arg3: memref<1x128xf32, #tpu.memory_space<vmem>>, %arg4: memref<2x128xf32, #tpu.memory_space<vmem>>) attributes {dimension_semantics = [#tpu.dimension_semantics<parallel>, #tpu.dimension_semantics<parallel>], iteration_bounds = array<i64: 1, 1>, scalar_prefetch = 0 : i64, scratch_operands = 0 : i64, tpu.core_type = #tpu.core_type<tc>, window_params = [{transform_indices = @transform_0, window_bounds = array<i64: 2, 128>}, {transform_indices = @transform_1, window_bounds = array<i64: 1, 128>}, {transform_indices = @transform_2, window_bounds = array<i64: 2, 128>}]} {
    %c0 = arith.constant 0 : index
    %c0_0 = arith.constant 0 : index
    %0 = vector.load %arg2[%c0, %c0_0] : memref<2x128xf32, #tpu.memory_space<vmem>>, vector<2x128xf32>
    %c0_1 = arith.constant 0 : index
    %c0_2 = arith.constant 0 : index
    %1 = vector.load %arg3[%c0_1, %c0_2] : memref<1x128xf32, #tpu.memory_space<vmem>>, vector<1x128xf32>
    %2 = vector.broadcast %1 : vector<1x128xf32> to vector<2x128xf32>
    %3 = arith.mulf %0, %2 : vector<2x128xf32>
    %c0_3 = arith.constant 0 : index
    %c0_4 = arith.constant 0 : index
    %4 = vector.load %arg4[%c0_3, %c0_4] : memref<2x128xf32, #tpu.memory_space<vmem>>, vector<2x128xf32>
    tpu.vector_store %arg4[%c0_3, %c0_4], %3 {strides = array<i32>} : memref<2x128xf32, #tpu.memory_space<vmem>>, vector<2x128xf32>,
    return
  }
  func.func @transform_0(%arg0: i32, %arg1: i32) -> (i32, i32) {
    %c0_i32 = arith.constant 0 : i32
    return %arg0, %arg1 : i32, i32
  }
  func.func @transform_1(%arg0: i32, %arg1: i32) -> (i32, i32) {
    %c0_i32 = arith.constant 0 : i32
    %c0_i32_0 = arith.constant 0 : i32
    return %c0_i32, %arg1 : i32, i32
  }
  func.func @transform_2(%arg0: i32, %arg1: i32) -> (i32, i32) {
    %c0_i32 = arith.constant 0 : i32
    return %arg0, %arg1 : i32, i32
  }
}

</mosaic_0001>

<bundles_post_ra>
// kernel: tpu_custom_call.1
= control target key start
LH: loop header
LB: loop body
LE: loop exit
PB: predicated region body
PF: predicated region fallthrough
CT: control target
= control target key end

     0   :  { %7 = vsyncpa [#allocation3], 0  ;;  %s122_s0 = inlined_call_operand.hbm [shape: f32[2,128], index: 0, kind: input, shape index: {}]   ;;  %s123_s1 = inlined_call_operand.vmem [shape: f32[1,128], index: 1, kind: input, shape index: {}]   ;;  %s124_s2 = inlined_call_operand.hbm [shape: f32[2,128], index: 2, kind: output, shape index: {}]  }
   0x1   :  { %8 = vsyncpa [#allocation4], 0  ;;  %s96_s9 = smov [#allocation2]  }
   0x2   :  { %s15_s10 = sshll.u32 %s96_s9, 4  ;;  %s16_s10 = int_to_ptr.vmem [resolvable:$true] %s15_s10 }
   0x3   :  { %s60_s11 = scalar_lea.vmem %s16_s10, 32  ;;  %p65_p1 = scmp.lt.s32.totalorder %s16_s10, %s16_s10 }
   0x4   :  { %p61_p0 = scmp.ne.s32.totalorder %s16_s10, %s60_s11  ;;  %p66_p2 = scmp.lt.s32.totalorder %s60_s11, %s60_s11 }
   0x6   :  { %p67_p3 = por %p66_p2, %p65_p1 }
   0x8   :  { %p68_p4 = pnand %p67_p3, %p61_p0 }
   0xa   :  { %71 = shalt.err (!%p68_p4)
}
   0xb   :  { %18 = dma.hbm_to_vmem [thread:$0]  %s122_s0, 32, %s16_s10, [#allocation3]  }
   0xc   :  { %92 = dma.done.wait [#allocation3], 32  }
   0xd   :  { %93 = vsyncadd [#allocation3], 4294967264  ;;  %s97_s14 = smov [#allocation5]   ;;  %v24_v0 = vld [vmem:[#allocation2] sm:$0x3] }
   0xe   :  { %s40_s15 = sshll.u32 %s97_s14, 4  ;;  %v49_v1 = vld [vmem:[%s123_s1] ss:$0 sm:$0xff]  ;;  %s41_s15 = int_to_ptr.vmem [resolvable:$true] %s40_s15 }
   0xf   :  { %v32_v2 = vmul.f32 %v49_v1, %v24_v0  ;;  %s72_s18 = scalar_lea.vmem %s41_s15, 32  ;;  %p77_p6 = scmp.lt.s32.totalorder %s41_s15, %s41_s15 }
  0x10   :  { %p73_p5 = scmp.ne.s32.totalorder %s41_s15, %s72_s18  ;;  %p78_p7 = scmp.lt.s32.totalorder %s72_s18, %s72_s18 }
  0x11   :  { %33 = vst [vmem:[#allocation5] sm:$0x3] %v32_v2 }
  0x12   :  { %p79_p8 = por %p78_p7, %p77_p6 }
  0x14   :  { %p80_p9 = pnand %p79_p8, %p73_p5 }
  0x16   :  { %83 = shalt.err (!%p80_p9)
}
  0x17   :  { %43 = dma.vmem_to_hbm [thread:$0]  %s41_s15, 32, %s124_s2, [#allocation4]  }
  0x18   :  { %94 = dma.done.wait [#allocation4], 32  }
  0x19   :  { %95 = vsyncadd [#allocation4], 4294967264 }
  0x1a   :  { %47 = vsyncpa [#allocation3], 1 }
  0x1b   :  { %48 = vsyncpa [#allocation4], 1 }

</bundles_post_ra>
